<compile_context>
chip_gen: v7x
topology: tpu7x:2x2x1
jax: 0.10.0
libtpu: 0.0.40
codegen_flags: <defaults>
</compile_context>

<pallas_src>
import math

import jax
import jax.numpy as jnp
from jax.experimental import pallas as pl
from jax.experimental.pallas import tpu as pltpu


def _prenorm_kernel(x_ref, shift_ref, scale_ref, o_ref):
    # x_ref: (tile_rows, L); shift/scale: (1, L) broadcast over rows.
    o_ref[...] = ((x_ref[...] + shift_ref[...]) * scale_ref[...]).astype(o_ref.dtype)


def _choose_fold(rows, n_units, max_lanes=4096):
    """Largest k such that k*n_units is a multiple of 128, <= max_lanes, and
    k divides rows (so no padding is needed).  Returns 1 if no fold applies."""
    k0 = 128 // math.gcd(n_units, 128)
    best = 1
    k = k0
    while k * n_units <= max_lanes:
        if rows % k == 0:
            best = k
        k += k0
    return best


def prenorm_forward(x, shift=None, scale=None, *, target_block_bytes=2 << 20,
                    max_lanes=4096):
    """(x + shift) * scale with shift/scale broadcast over the last axis."""
    assert shift is not None or scale is not None
    n_units = int(shift.shape[0] if shift is not None else scale.shape[0])
    if n_units != 1:
        assert x.shape[-1] == n_units, (
            f"Expected input last dim {n_units}, got {x.shape[-1]}.")
    if shift is None:
        shift = jnp.zeros((n_units,), x.dtype)
    if scale is None:
        scale = jnp.ones((n_units,), x.dtype)

    orig_shape = x.shape
    flat = x.reshape(-1, n_units)
    rows = flat.shape[0]

    # Fold rows into the lane axis -> lane-dense blocks (last dim multiple of
    # 128 when the fold applies).  Broadcast is preserved by tiling shift/scale
    # k times, since the per-n_units pattern repeats along the folded lanes.
    k = _choose_fold(rows, n_units, max_lanes)
    L = k * n_units
    folded_rows = rows // k
    x2 = flat.reshape(folded_rows, L)

    shift2 = jnp.tile(shift.astype(x2.dtype), k).reshape(1, L)
    scale2 = jnp.tile(scale.astype(x2.dtype), k).reshape(1, L)

    # Row tile sized for ~target_block_bytes per block; keep it a multiple of
    # the sublane packing for the dtype (8 f32, 16 bf16, 32 int8).
    itemsize = jnp.dtype(x2.dtype).itemsize
    sub = max(8, 32 // itemsize)
    tile_rows = max(sub, min(2048, target_block_bytes // max(1, L * itemsize)))
    tile_rows = (tile_rows // sub) * sub
    rows_rounded = ((folded_rows + sub - 1) // sub) * sub
    tile_rows = min(tile_rows, max(sub, rows_rounded))

    grid = (pl.cdiv(folded_rows, tile_rows),)

    out = pl.pallas_call(
        _prenorm_kernel,
        out_shape=jax.ShapeDtypeStruct((folded_rows, L), x2.dtype),
        grid_spec=pltpu.PrefetchScalarGridSpec(
            num_scalar_prefetch=0,
            grid=grid,
            in_specs=[
                pl.BlockSpec((tile_rows, L), lambda i: (i, 0)),
                pl.BlockSpec((1, L), lambda i: (0, 0)),
                pl.BlockSpec((1, L), lambda i: (0, 0)),
            ],
            out_specs=pl.BlockSpec((tile_rows, L), lambda i: (i, 0)),
        ),
        compiler_params=pltpu.CompilerParams(
            dimension_semantics=("parallel",),
        ),
    )(x2, shift2, scale2)

    return out.reshape(orig_shape)


# TODO(synk): start_updates / update_stats / stop_updates are host-side,
# stateful online-variance bookkeeping (and raise PreNormException to abort
# the forward); they are pre-training logic, not part of the inference forward
# pass, and are intentionally not ported to Pallas.


if __name__ == "__main__":
    key = jax.random.PRNGKey(0)
    k1, k2, k3 = jax.random.split(key, 3)

    # Main case: (batch, seq, hidden) with hidden = n_units = 32 (lane-folded path).
    n_units = 32
    x = jax.random.normal(k1, (2, 8, n_units), dtype=jnp.float32)
    shift = jax.random.normal(k2, (n_units,), dtype=jnp.float32) * 0.1
    scale = 1.0 + jax.random.uniform(k3, (n_units,), dtype=jnp.float32)

    out = jax.block_until_ready(prenorm_forward(x, shift, scale))
    ref = (x + shift) * scale
    assert out.shape == x.shape
    assert jnp.allclose(out, ref, atol=1e-6, rtol=1e-6)

    # Fallback path: odd n_units that cannot be lane-folded.
    n2 = 7
    xb = jax.random.normal(k1, (3, 5, n2), dtype=jnp.float32)
    sb = jax.random.normal(k2, (n2,), dtype=jnp.float32) * 0.1
    cb = 1.0 + jax.random.uniform(k3, (n2,), dtype=jnp.float32)
    ob = jax.block_until_ready(prenorm_forward(xb, sb, cb))
    assert jnp.allclose(ob, (xb + sb) * cb, atol=1e-6, rtol=1e-6)

    # n_units == 1 scalar-broadcast case (module allows this in update_stats).
    xc = jax.random.normal(k1, (4, 16), dtype=jnp.float32)
    sc = jnp.array([0.25], dtype=jnp.float32)
    cc = jnp.array([2.0], dtype=jnp.float32)
    oc = jax.block_until_ready(prenorm_forward(xc, sc, cc))
    assert jnp.allclose(oc, (xc + sc) * cc, atol=1e-6, rtol=1e-6)

    print("KERNEL_OK")
</pallas_src>

<mosaic_0001>
module attributes {stable_mosaic.version = 11 : i64} {
  func.func @_prenorm_kernel(%arg0: i32, %arg1: memref<8x512xf32, #tpu.memory_space<vmem>>, %arg2: memref<1x512xf32, #tpu.memory_space<vmem>>, %arg3: memref<1x512xf32, #tpu.memory_space<vmem>>, %arg4: memref<8x512xf32, #tpu.memory_space<vmem>>) attributes {dimension_semantics = [#tpu.dimension_semantics<parallel>], iteration_bounds = array<i64: 1>, scalar_prefetch = 0 : i64, scratch_operands = 0 : i64, tpu.core_type = #tpu.core_type<tc>, window_params = [{transform_indices = @transform_0, window_bounds = array<i64: 8, 512>}, {pipeline_mode = #tpu.pipeline_mode<synchronous>, transform_indices = @transform_1, window_bounds = array<i64: 1, 512>}, {pipeline_mode = #tpu.pipeline_mode<synchronous>, transform_indices = @transform_2, window_bounds = array<i64: 1, 512>}, {transform_indices = @transform_3, window_bounds = array<i64: 8, 512>}]} {
    %c0 = arith.constant 0 : index
    %c0_0 = arith.constant 0 : index
    %0 = vector.load %arg1[%c0, %c0_0] : memref<8x512xf32, #tpu.memory_space<vmem>>, vector<8x512xf32>
    %c0_1 = arith.constant 0 : index
    %c0_2 = arith.constant 0 : index
    %1 = vector.load %arg2[%c0_1, %c0_2] : memref<1x512xf32, #tpu.memory_space<vmem>>, vector<1x512xf32>
    %2 = vector.broadcast %1 : vector<1x512xf32> to vector<8x512xf32>
    %3 = arith.addf %0, %2 : vector<8x512xf32>
    %c0_3 = arith.constant 0 : index
    %c0_4 = arith.constant 0 : index
    %4 = vector.load %arg3[%c0_3, %c0_4] : memref<1x512xf32, #tpu.memory_space<vmem>>, vector<1x512xf32>
    %5 = vector.broadcast %4 : vector<1x512xf32> to vector<8x512xf32>
    %6 = arith.mulf %3, %5 : vector<8x512xf32>
    %c0_5 = arith.constant 0 : index
    %c0_6 = arith.constant 0 : index
    %7 = vector.load %arg4[%c0_5, %c0_6] : memref<8x512xf32, #tpu.memory_space<vmem>>, vector<8x512xf32>
    tpu.vector_store %arg4[%c0_5, %c0_6], %6 {strides = array<i32>} : memref<8x512xf32, #tpu.memory_space<vmem>>, vector<8x512xf32>,
    return
  }
  func.func @transform_0(%arg0: i32) -> (i32, i32) {
    %c0_i32 = arith.constant 0 : i32
    %c0_i32_0 = arith.constant 0 : i32
    return %arg0, %c0_i32 : i32, i32
  }
  func.func @transform_1(%arg0: i32) -> (i32, i32) {
    %c0_i32 = arith.constant 0 : i32
    %c0_i32_0 = arith.constant 0 : i32
    %c0_i32_1 = arith.constant 0 : i32
    return %c0_i32, %c0_i32_0 : i32, i32
  }
  func.func @transform_2(%arg0: i32) -> (i32, i32) {
    %c0_i32 = arith.constant 0 : i32
    %c0_i32_0 = arith.constant 0 : i32
    %c0_i32_1 = arith.constant 0 : i32
    return %c0_i32, %c0_i32_0 : i32, i32
  }
  func.func @transform_3(%arg0: i32) -> (i32, i32) {
    %c0_i32 = arith.constant 0 : i32
    %c0_i32_0 = arith.constant 0 : i32
    return %arg0, %c0_i32 : i32, i32
  }
}

</mosaic_0001>

<bundles_post_ra>
// kernel: tpu_custom_call.1
= control target key start
LH: loop header
LB: loop body
LE: loop exit
PB: predicated region body
PF: predicated region fallthrough
CT: control target
= control target key end

     0   :  { %8 = vsyncpa [#allocation3], 0  ;;  %s452_s0 = inlined_call_operand.hbm [shape: f32[1,512], index: 0, kind: input, shape index: {}]   ;;  %s453_s1 = inlined_call_operand.hbm [shape: f32[1,512], index: 1, kind: input, shape index: {}]   ;;  %s454_s2 = inlined_call_operand.vmem [shape: f32[1,512], index: 2, kind: input, shape index: {}]   ;;  %s455_s3 = inlined_call_operand.hbm [shape: f32[1,512], index: 3, kind: output, shape index: {}]  }
   0x1   :  { %9 = vsyncpa [#allocation6], 0 }
   0x2   :  { %10 = vsyncpa [#allocation4], 0 }
   0x3   :  { %15 = vsyncadd [#allocation3], 448  ;;  %s361_s12 = smov [#allocation2]   ;;  %s289_s16 = scalar_lea.hbm %s452_s0, 64 }
   0x4   :  { %s16_s13 = sshll.u32 %s361_s12, 4  ;;  %p290_p0 = scmp.ne.s32.totalorder %s452_s0, %s289_s16  ;;  %s17_s13 = int_to_ptr.vmem [resolvable:$true] %s16_s13 }
   0x5   :  { %p293_p1 = scmp.lt.u32.totalorder %s289_s16, %s452_s0 }
   0x7   :  { %p295_p2 = pnand %p293_p1, %p290_p0 }
   0x9   :  { %298 = shalt.err (!%p295_p2)
}
   0xa   :  { %s299_s21 = scalar_lea.vmem %s17_s13, 64  ;;  %s303_s22 = scalar_lea.vmem %s17_s13, 512 }
   0xb   :  { %p300_p3 = scmp.ne.s32.totalorder %s17_s13, %s299_s21  ;;  %p304_p4 = scmp.lt.s32.totalorder %s17_s13, %s17_s13 }
   0xc   :  { %p305_p5 = scmp.lt.s32.totalorder %s303_s22, %s299_s21 }
   0xe   :  { %p306_p6 = por %p305_p5, %p304_p4 }
  0x10   :  { %p307_p7 = pnand %p306_p6, %p300_p3 }
  0x12   :  { %310 = shalt.err (!%p307_p7)
}
  0x13   :  { %s362_s23 = smov 64   ;;  %s363_s24 = smov 4  }
  0x14   :  { %22 = dma.hbm_to_vmem [thread:$0]  %s452_s0, 64, %s17_s13, [#allocation3], %s362_s23, %s362_s23, %s363_s24  }
  0x15   :  { %s364_s27 = smov [#allocation5]   ;;  %s311_s4 = scalar_lea.hbm %s453_s1, 64 }
  0x16   :  { %s29_s28 = sshll.u32 %s364_s27, 4  ;;  %p312_p8 = scmp.ne.s32.totalorder %s453_s1, %s311_s4  ;;  %s30_s28 = int_to_ptr.vmem [resolvable:$true] %s29_s28 }
  0x17   :  { %p315_p9 = scmp.lt.u32.totalorder %s311_s4, %s453_s1 }
  0x19   :  { %p317_p10 = pnand %p315_p9, %p312_p8 }
  0x1b   :  { %320 = shalt.err (!%p317_p10)
}
  0x1c   :  { %s321_s9 = scalar_lea.vmem %s30_s28, 64  ;;  %p326_p12 = scmp.lt.s32.totalorder %s30_s28, %s30_s28 }
  0x1d   :  { %p322_p11 = scmp.ne.s32.totalorder %s30_s28, %s321_s9  ;;  %p327_p13 = scmp.lt.s32.totalorder %s321_s9, %s321_s9 }
  0x1f   :  { %p328_p0 = por %p327_p13, %p326_p12 }
  0x21   :  { %p329_p1 = pnand %p328_p0, %p322_p11 }
  0x23   :  { %332 = shalt.err (!%p329_p1)
}
  0x24   :  { %32 = dma.hbm_to_vmem [thread:$0]  %s453_s1, 64, %s30_s28, [#allocation6]  }
  0x25   :  { %355 = dma.done.wait [#allocation3], 512  }
  0x26   :  { %356 = vsyncadd [#allocation3], 4294966784 }
  0x27   :  { %357 = dma.done.wait [#allocation6], 64  }
  0x28   :  { %358 = vsyncadd [#allocation6], 4294967232  ;;  %v51_v0 = vlaneseq  ;;  %v365_v1 = vmov 1966171168   ;;  %v49_v9 = vld [vmem:[#allocation5] sm:$0xf] }
  0x29   :  { %v72_v2 = vunpack.c.l.s4 %v365_v1  ;;  %v151_v11 = vld [vmem:[%s454_s2] sm:$0xf]  ;;  %v42_v43 = vld [vmem:[#allocation2 + $0x4] sm:$0xf]  ;;  %v45_v49 = vld [vmem:[#allocation2 + $0x10] sm:$0xf] }
  0x2a   :  { %v52_v3 = vshrl.u32 %v51_v0, 7  ;;  %vm417_vm0 = vcmp.lt.s32.totalorder %v51_v0, 512  ;;  %v41_v41 = vld [vmem:[#allocation2] sm:$0xf]  ;;  %v46_v51 = vld [vmem:[#allocation2 + $0x14] sm:$0xf] }
  0x2b   :  { %v73_v4 = vunpack.c.0.s8 %v72_v2  ;;  %v43_v55 = vld [vmem:[#allocation2 + $0x8] sm:$0xf]  ;;  %v44_v56 = vld [vmem:[#allocation2 + $0xc] sm:$0xf] }
  0x2c   :  { %v53_v5 = vsub.s32 0, %v52_v3  ;;  %v57_v6 = vsub.s32 1, %v52_v3  ;;  %v61_v7 = vsub.s32 2, %v52_v3  ;;  %v65_v8 = vsub.s32 3, %v52_v3 }
  0x2d   :  { %v76_v10 = vsub.s32 %v73_v4, %v52_v3 }
  0x2e   :  { %v54_v12 = vrot.slane %v49_v9, %v53_v5  ;;  %v58_v13 = vrot.slane %v49_v9, %v57_v6  ;;  %v62_v14 = vrot.slane %v49_v9, %v61_v7  ;;  %v66_v15 = vrot.slane %v49_v9, %v65_v8 }
  0x2f   :  { %v156_v16 = vrot.slane %v151_v11, %v53_v5  ;;  %v160_v17 = vrot.slane %v151_v11, %v57_v6  ;;  %v164_v18 = vrot.slane %v151_v11, %v61_v7  ;;  %v168_v19 = vrot.slane %v151_v11, %v65_v8  ;;  %v47_v7 = vld [vmem:[#allocation2 + $0x18] sm:$0xf] }
  0x30   :  { %v67_v20 = vcombine.low %v54_v12, %v58_v13  ;;  %v69_v21 = vcombine.low %v62_v14, %v66_v15  ;;  %v68_v22 = vcombine.high %v54_v12, %v58_v13  ;;  %v70_v23 = vcombine.high %v62_v14, %v66_v15  ;;  %v48_v13 = vld [vmem:[#allocation2 + $0x1c] sm:$0xf] }
  0x31   :  { %v169_v24 = vcombine.low %v156_v16, %v160_v17  ;;  %v171_v25 = vcombine.low %v164_v18, %v168_v19  ;;  %v170_v27 = vcombine.high %v156_v16, %v160_v17  ;;  %v172_v28 = vcombine.high %v164_v18, %v168_v19 }
  0x32   :  { %v77_v29 = vrot.slane %v67_v20, %v76_v10  ;;  %v91_v30 = vrot.slane %v69_v21, %v76_v10  ;;  %v84_v31 = vrot.slane %v68_v22, %v76_v10  ;;  %v98_v32 = vrot.slane %v70_v23, %v76_v10 }
  0x33   :  { %v179_v33 = vrot.slane %v169_v24, %v76_v10  ;;  %v193_v34 = vrot.slane %v171_v25, %v76_v10  ;;  %v186_v35 = vrot.slane %v170_v27, %v76_v10  ;;  %v200_v36 = vrot.slane %v172_v28, %v76_v10 }
  0x34   :  { %v99_v37 = vcombine.low %v77_v29, %v91_v30  ;;  %v100_v38 = vcombine.high %v77_v29, %v91_v30  ;;  %v101_v39 = vcombine.low %v84_v31, %v98_v32  ;;  %v102_v40 = vcombine.high %v84_v31, %v98_v32 }
  0x35   :  { %v201_v42 = vcombine.low %v179_v33, %v193_v34  ;;  %v202_v44 = vcombine.high %v179_v33, %v193_v34  ;;  %v203_v45 = vcombine.low %v186_v35, %v200_v36  ;;  %v204_v46 = vcombine.high %v186_v35, %v200_v36 }
  0x36   :  { %v109_v47 = vrot.slane %v99_v37, %v76_v10  ;;  %v123_v48 = vrot.slane %v100_v38, %v76_v10  ;;  %v116_v50 = vrot.slane %v101_v39, %v76_v10  ;;  %v130_v52 = vrot.slane %v102_v40, %v76_v10 }
  0x37   :  { %v211_v53 = vrot.slane %v201_v42, %v76_v10  ;;  %v225_v54 = vrot.slane %v202_v44, %v76_v10  ;;  %v218_v57 = vrot.slane %v203_v45, %v76_v10  ;;  %v232_v58 = vrot.slane %v204_v46, %v76_v10 }
  0x38   :  { %v143_v59 = vadd.f32 %v109_v47, %v41_v41  ;;  %v144_v60 = vadd.f32 %v123_v48, %v42_v43  ;;  %v131_v61 = vcombine.high %v109_v47, %v109_v47  ;;  %v133_v62 = vcombine.high %v123_v48, %v123_v48 }
  0x39   :  { %v233_v63 = vcombine.high %v211_v53, %v211_v53  ;;  %v235_v0 = vcombine.high %v225_v54, %v225_v54  ;;  %v147_v1 = vadd.f32 %v116_v50, %v45_v49  ;;  %v148_v2 = vadd.f32 %v130_v52, %v46_v51 }
  0x3a   :  { %v245_v3 = vmul.f32 %v211_v53, %v143_v59  ;;  %v246_v4 = vmul.f32 %v225_v54, %v144_v60  ;;  %v145_v5 = vadd.f32 %v131_v61, %v43_v55  ;;  %v146_v6 = vadd.f32 %v133_v62, %v44_v56 }
  0x3b   :  { %v249_v8 = vmul.f32 %v218_v57, %v147_v1  ;;  %v250_v9 = vmul.f32 %v232_v58, %v148_v2  ;;  %v132_v11 = vcombine.high %v116_v50, %v116_v50  ;;  %v234_v12 = vcombine.high %v218_v57, %v218_v57 }
  0x3c   :  { %257 = vst.msk [vmem:[#allocation7] sm:$0xf] %vm417_vm0, %v245_v3  ;;  %258 = vst.msk [vmem:[#allocation7 + $0x4] sm:$0xf] %vm417_vm0, %v246_v4  ;;  %v247_v10 = vmul.f32 %v233_v63, %v145_v5  ;;  %v248_v14 = vmul.f32 %v235_v0, %v146_v6  ;;  %v134_v15 = vcombine.high %v130_v52, %v130_v52 }
  0x3d   :  { %v236_v16 = vcombine.high %v232_v58, %v232_v58  ;;  %261 = vst.msk [vmem:[#allocation7 + $0x10] sm:$0xf] %vm417_vm0, %v249_v8  ;;  %262 = vst.msk [vmem:[#allocation7 + $0x14] sm:$0xf] %vm417_vm0, %v250_v9  ;;  %v149_v17 = vadd.f32 %v132_v11, %v47_v7 }
  0x3e   :  { %259 = vst.msk [vmem:[#allocation7 + $0x8] sm:$0xf] %vm417_vm0, %v247_v10  ;;  %260 = vst.msk [vmem:[#allocation7 + $0xc] sm:$0xf] %vm417_vm0, %v248_v14  ;;  %v150_v18 = vadd.f32 %v134_v15, %v48_v13 }
  0x3f   :  { %v251_v19 = vmul.f32 %v234_v12, %v149_v17 }
  0x40   :  { %v252_v20 = vmul.f32 %v236_v16, %v150_v18 }
  0x41   :  { %263 = vst.msk [vmem:[#allocation7 + $0x18] sm:$0xf] %vm417_vm0, %v251_v19 }
  0x42   :  { %264 = vst.msk [vmem:[#allocation7 + $0x1c] sm:$0xf] %vm417_vm0, %v252_v20 }
  0x43   :  { %269 = vsyncadd [#allocation4], 448  ;;  %s366_s1 = smov [#allocation7]  }
  0x44   :  { %s270_s2 = sshll.u32 %s366_s1, 4  ;;  %s271_s2 = int_to_ptr.vmem [resolvable:$true] %s270_s2 }
  0x45   :  { %s333_s13 = scalar_lea.vmem %s271_s2, 64  ;;  %s337_s14 = scalar_lea.vmem %s271_s2, 512 }
  0x46   :  { %p334_p2 = scmp.ne.s32.totalorder %s271_s2, %s333_s13  ;;  %p338_p3 = scmp.lt.s32.totalorder %s271_s2, %s271_s2 }
  0x47   :  { %p339_p4 = scmp.lt.s32.totalorder %s337_s14, %s333_s13 }
  0x49   :  { %p340_p5 = por %p339_p4, %p338_p3 }
  0x4b   :  { %p341_p6 = pnand %p340_p5, %p334_p2 }
  0x4d   :  { %344 = shalt.err (!%p341_p6)
}
  0x4e   :  { %s345_s17 = scalar_lea.hbm %s455_s3, 64 }
  0x4f   :  { %p346_p7 = scmp.ne.s32.totalorder %s455_s3, %s345_s17  ;;  %p349_p8 = scmp.lt.u32.totalorder %s345_s17, %s455_s3 }
  0x51   :  { %p351_p9 = pnand %p349_p8, %p346_p7 }
  0x53   :  { %354 = shalt.err (!%p351_p9)
}
  0x54   :  { %276 = dma.vmem_to_hbm [thread:$0]  %s271_s2, 64, %s455_s3, [#allocation4], %s362_s23, %s362_s23, %s363_s24  }
  0x55   :  { %359 = dma.done.wait [#allocation4], 512  }
  0x56   :  { %360 = vsyncadd [#allocation4], 4294966784 }
  0x57   :  { %280 = vsyncpa [#allocation3], 1 }
  0x58   :  { %281 = vsyncpa [#allocation6], 1 }
  0x59   :  { %282 = vsyncpa [#allocation4], 1 }

</bundles_post_ra>
